<compile_context>
chip_gen: v6e
topology: v6e:2x2x1
jax: 0.10.0
libtpu: 0.0.40
codegen_flags: <defaults>
</compile_context>

<pallas_src>
import functools

import jax
import jax.numpy as jnp
from jax.experimental import pallas as pl
from jax.experimental.pallas import tpu as pltpu


def _addcoords_kernel(x_ref, o_ref, *, w, tile, scale_x, scale_y):
    # x_ref: (TB, C, T) block, o_ref: (TB, C+2, T) block (T = tile of flat H*W)
    tb, c, t = x_ref.shape

    # 1) Pass-through copy of the input channels (lane-dense full-width store).
    o_ref[:, :c, :] = x_ref[...]

    # 2) Coordinate slab (2, T): row 0 = xx (varies along H), row 1 = yy
    #    (varies along W).  Computed once per spatial tile, broadcast across
    #    the folded batch dim.  Pure VPU work hidden under the DMA-bound copy.
    base = pl.program_id(1) * tile  # flat-index origin of this spatial tile
    idx = (jax.lax.broadcasted_iota(jnp.int32, (2, t), 1) + base).astype(
        jnp.float32)
    ch = jax.lax.broadcasted_iota(jnp.int32, (2, t), 0)
    # row = flat // w, col = flat % w, done in f32 (exact for this module's
    # spatial sizes 4..128, i.e. flat < 16384; avoids vector integer div/rem).
    row = jnp.floor((idx + 0.5) * jnp.float32(1.0 / w))
    col = idx - row * jnp.float32(w)
    xx = row * jnp.float32(scale_x) - 1.0
    yy = col * jnp.float32(scale_y) - 1.0
    coords = jnp.where(ch == 0, xx, yy).astype(o_ref.dtype)
    o_ref[:, c:c + 2, :] = jnp.broadcast_to(coords[None], (tb, 2, t))
    # TODO(synk): the with_r branch of the PyTorch module computes `rr` but
    # never returns or concatenates it (dead code), so it is not implemented.


def _choose_blocks(batch, c, hw, itemsize):
    """Pick (TB, T): batch-fold factor and lane-dense spatial tile."""
    # One (input + output) block <= ~6 MiB so the double-buffered working set
    # stays under v5e's 16 MiB default scoped VMEM (and far under v7x's 64 MiB).
    block_budget = 6 * 1024 * 1024
    bytes_per_spatial = (2 * c + 2) * itemsize  # C in + (C+2) out per element
    per_image = bytes_per_spatial * hw

    if per_image <= block_budget:
        # Whole image fits: fold batch elements to amortize per-step overhead.
        max_tb = max(1, block_budget // per_image)
        tb = 1
        for cand in range(min(batch, max_tb), 0, -1):
            if batch % cand == 0:
                tb = cand
                break
        return tb, hw

    # Image too big for one block: keep TB=1 and halve the flattened spatial
    # tile while it stays a lane-dense multiple of 128 that divides H*W.
    t = hw
    while (bytes_per_spatial * t > block_budget and t % 2 == 0
           and (t // 2) % 128 == 0):
        t //= 2
    return 1, t


def add_coords(x):
    """x: (B, C, H, W) -> (B, C+2, H, W) with xx/yy coordinate channels."""
    B, C, H, W = x.shape
    HW = H * W
    # NOTE: H == 1 or W == 1 yields NaN coordinate channels (matches the
    # PyTorch module's 0/0 behavior); such shapes are outside its grid set.
    scale_x = (2.0 / (H - 1)) if H > 1 else float("nan")
    scale_y = (2.0 / (W - 1)) if W > 1 else float("nan")

    tb, t = _choose_blocks(B, C, HW, x.dtype.itemsize)
    grid = (B // tb, HW // t)

    # Flatten H*W so the last (lane) dim is dense.
    x_flat = x.reshape(B, C, HW)

    kernel = functools.partial(
        _addcoords_kernel, w=W, tile=t, scale_x=scale_x, scale_y=scale_y)

    in_block_bytes = tb * C * t * x.dtype.itemsize
    out_block_bytes = tb * (C + 2) * t * x.dtype.itemsize
    vmem_need = 2 * (in_block_bytes + out_block_bytes) + (1 << 20)
    compiler_params = pltpu.CompilerParams(
        dimension_semantics=("parallel", "parallel"),
        vmem_limit_bytes=(vmem_need if vmem_need > (12 << 20) else None),
    )

    out_flat = pl.pallas_call(
        kernel,
        out_shape=jax.ShapeDtypeStruct((B, C + 2, HW), x.dtype),
        grid_spec=pltpu.PrefetchScalarGridSpec(
            num_scalar_prefetch=0,
            grid=grid,
            in_specs=[pl.BlockSpec((tb, C, t), lambda b, s: (b, 0, s))],
            out_specs=pl.BlockSpec((tb, C + 2, t), lambda b, s: (b, 0, s)),
        ),
        compiler_params=compiler_params,
    )(x_flat)
    return out_flat.reshape(B, C + 2, H, W)


def _reference(x):
    B, C, H, W = x.shape
    xx = (jnp.arange(H, dtype=jnp.float32) / (H - 1) * 2 - 1)[:, None]
    yy = (jnp.arange(W, dtype=jnp.float32) / (W - 1) * 2 - 1)[None, :]
    xx = jnp.broadcast_to(xx, (H, W))[None, None]
    yy = jnp.broadcast_to(yy, (H, W))[None, None]
    xx = jnp.broadcast_to(xx, (B, 1, H, W)).astype(x.dtype)
    yy = jnp.broadcast_to(yy, (B, 1, H, W)).astype(x.dtype)
    return jnp.concatenate([x, xx, yy], axis=1)


if __name__ == "__main__":
    key = jax.random.PRNGKey(0)

    # Primary test shape (matches the module's 16x16 grid).
    B, C, H, W = 2, 4, 16, 16
    x = jax.random.normal(key, (B, C, H, W), dtype=jnp.float32)
    out = jax.block_until_ready(add_coords(x))
    ref = _reference(x)
    assert out.shape == (B, C + 2, H, W), out.shape
    assert jnp.allclose(out, ref, atol=1e-6), float(jnp.max(jnp.abs(out - ref)))

    # A second small shape (8x8 grid) to sanity-check generality.
    x2 = jax.random.normal(jax.random.PRNGKey(1), (2, 3, 8, 8), dtype=jnp.float32)
    out2 = jax.block_until_ready(add_coords(x2))
    assert jnp.allclose(out2, _reference(x2), atol=1e-6)

    print("KERNEL_OK")
</pallas_src>

<mosaic_0001>
module attributes {stable_mosaic.version = 11 : i64} {
  func.func @_addcoords_kernel(%arg0: i32, %arg1: i32, %arg2: memref<2x4x256xf32, #tpu.memory_space<vmem>>, %arg3: memref<2x6x256xf32, #tpu.memory_space<vmem>>) attributes {dimension_semantics = [#tpu.dimension_semantics<parallel>, #tpu.dimension_semantics<parallel>], iteration_bounds = array<i64: 1, 1>, scalar_prefetch = 0 : i64, scratch_operands = 0 : i64, tpu.core_type = #tpu.core_type<tc>, window_params = [{transform_indices = @transform_0, window_bounds = array<i64: 2, 4, 256>}, {transform_indices = @transform_1, window_bounds = array<i64: 2, 6, 256>}]} {
    %c0 = arith.constant 0 : index
    %c0_0 = arith.constant 0 : index
    %c0_1 = arith.constant 0 : index
    %0 = vector.load %arg2[%c0, %c0_0, %c0_1] : memref<2x4x256xf32, #tpu.memory_space<vmem>>, vector<2x4x256xf32>
    %c0_2 = arith.constant 0 : index
    %c0_3 = arith.constant 0 : index
    %c0_4 = arith.constant 0 : index
    %1 = vector.load %arg3[%c0_2, %c0_3, %c0_4] : memref<2x6x256xf32, #tpu.memory_space<vmem>>, vector<2x4x256xf32>
    tpu.vector_store %arg3[%c0_2, %c0_3, %c0_4], %0 {strides = array<i32>} : memref<2x6x256xf32, #tpu.memory_space<vmem>>, vector<2x4x256xf32>,
    %c256_i32 = arith.constant 256 : i32
    %2 = arith.muli %arg1, %c256_i32 : i32
    %3 = tpu.iota {dimensions = array<i32: 1>} : vector<2x256xi32>
    %4 = vector.broadcast %2 : i32 to vector<2x256xi32>
    %5 = arith.addi %3, %4 : vector<2x256xi32>
    %6 = arith.sitofp %5 : vector<2x256xi32> to vector<2x256xf32>
    %7 = tpu.iota {dimensions = array<i32: 0>} : vector<2x256xi32>
    %cst = arith.constant 5.000000e-01 : f32
    %8 = vector.broadcast %cst : f32 to vector<2x256xf32>
    %9 = arith.addf %6, %8 : vector<2x256xf32>
    %cst_5 = arith.constant 6.250000e-02 : f32
    %10 = vector.broadcast %cst_5 : f32 to vector<2x256xf32>
    %11 = arith.mulf %9, %10 : vector<2x256xf32>
    %12 = math.floor %11 : vector<2x256xf32>
    %cst_6 = arith.constant 1.600000e+01 : f32
    %13 = vector.broadcast %cst_6 : f32 to vector<2x256xf32>
    %14 = arith.mulf %12, %13 : vector<2x256xf32>
    %15 = arith.subf %6, %14 : vector<2x256xf32>
    %cst_7 = arith.constant 0.13333334 : f32
    %16 = vector.broadcast %cst_7 : f32 to vector<2x256xf32>
    %17 = arith.mulf %12, %16 : vector<2x256xf32>
    %cst_8 = arith.constant 1.000000e+00 : f32
    %18 = vector.broadcast %cst_8 : f32 to vector<2x256xf32>
    %19 = arith.subf %17, %18 : vector<2x256xf32>
    %cst_9 = arith.constant 0.13333334 : f32
    %20 = vector.broadcast %cst_9 : f32 to vector<2x256xf32>
    %21 = arith.mulf %15, %20 : vector<2x256xf32>
    %cst_10 = arith.constant 1.000000e+00 : f32
    %22 = vector.broadcast %cst_10 : f32 to vector<2x256xf32>
    %23 = arith.subf %21, %22 : vector<2x256xf32>
    %c0_i32 = arith.constant 0 : i32
    %24 = vector.broadcast %c0_i32 : i32 to vector<2x256xi32>
    %25 = arith.cmpi eq, %7, %24 : vector<2x256xi32>
    %26 = arith.select %25, %19, %23 : vector<2x256xi1>, vector<2x256xf32>
    %27 = vector.shape_cast %26 : vector<2x256xf32> to vector<1x2x256xf32>
    %28 = vector.shape_cast %27 : vector<1x2x256xf32> to vector<1x2x256xf32>
    %29 = vector.broadcast %28 : vector<1x2x256xf32> to vector<2x2x256xf32>
    %c0_11 = arith.constant 0 : index
    %c4 = arith.constant 4 : index
    %c0_12 = arith.constant 0 : index
    %30 = vector.load %arg3[%c0_11, %c4, %c0_12] : memref<2x6x256xf32, #tpu.memory_space<vmem>>, vector<2x2x256xf32>
    tpu.vector_store %arg3[%c0_11, %c4, %c0_12], %29 {strides = array<i32>} : memref<2x6x256xf32, #tpu.memory_space<vmem>>, vector<2x2x256xf32>,
    return
  }
  func.func @transform_0(%arg0: i32, %arg1: i32) -> (i32, i32, i32) {
    %c0_i32 = arith.constant 0 : i32
    %c0_i32_0 = arith.constant 0 : i32
    return %arg0, %c0_i32, %arg1 : i32, i32, i32
  }
  func.func @transform_1(%arg0: i32, %arg1: i32) -> (i32, i32, i32) {
    %c0_i32 = arith.constant 0 : i32
    %c0_i32_0 = arith.constant 0 : i32
    return %arg0, %c0_i32, %arg1 : i32, i32, i32
  }
}

</mosaic_0001>

<bundles_post_ra>
// kernel: tpu_custom_call.1
= control target key start
LH: loop header
LB: loop body
LE: loop exit
PB: predicated region body
PF: predicated region fallthrough
CT: control target
= control target key end

     0   :  { %6 = vsyncpa [#allocation3], 0  ;;  %s112_s6 = smov [#allocation2]   ;;  %s152_s0 = inlined_call_operand.hbm [shape: f32[2,4,256], index: 0, kind: input, shape index: {}]   ;;  %s153_s1 = inlined_call_operand.vmem [shape: f32[2,6,256], index: 1, kind: output, shape index: {}]  }
   0x1   :  { %s12_s7 = sshll.u32 %s112_s6, 4  ;;  %s13_s7 = int_to_ptr.vmem [resolvable:$true] %s12_s7 }
   0x2   :  { %s98_s8 = scalar_lea.vmem %s13_s7, 256  ;;  %p103_p1 = scmp.lt.s32.totalorder %s13_s7, %s13_s7 }
   0x3   :  { %p99_p0 = scmp.ne.s32.totalorder %s13_s7, %s98_s8  ;;  %p104_p2 = scmp.lt.s32.totalorder %s98_s8, %s98_s8 }
   0x5   :  { %p105_p3 = por %p104_p2, %p103_p1 }
   0x7   :  { %p106_p4 = pnand %p105_p3, %p99_p0 }
   0x9   :  { %109 = shalt.err (!%p106_p4)
}
   0xa   :  { %s113_s9 = smov 128   ;;  %s114_s10 = smov 8  }
   0xb   :  { %18 = dma.hbm_to_vmem [thread:$0]  %s152_s0, 256, %s13_s7, [#allocation3], %s113_s9, %s113_s9, %s114_s10  }
   0xc   :  { %110 = dma.done.wait [#allocation3], 256  }
   0xd   :  { %111 = vsyncadd [#allocation3], 4294967040  ;;  %v35_v0 = vlaneseq  ;;  %v22_v6 = vld [vmem:[#allocation2] sm:$0xff]  ;;  %v23_v7 = vld [vmem:[#allocation2 + $0x8] sm:$0xff] }
   0xe   :  { %30 = vst [vmem:[%s153_s1] sm:$0xf] %v22_v6  ;;  %v26_v8 = vcombine.high %v22_v6, %v22_v6  ;;  %32 = vst [vmem:[%s153_s1 + $0x10] sm:$0xf] %v23_v7  ;;  %v27_v9 = vcombine.high %v23_v7, %v23_v7 }
   0xf   :  { %v36_v1 = vand.u32 127, %v35_v0  ;;  %v44_v17 = vshrl.u32 %v35_v0, 7 }
  0x10   :  { %31 = vst [vmem:[%s153_s1 + $0x8] sm:$0xf] %v26_v8  ;;  %33 = vst [vmem:[%s153_s1 + $0x18] sm:$0xf] %v27_v9 }
  0x11   :  { %v41_v2 = vcvt.s32.f32 %v36_v1  ;;  %v37_v3 = vadd.s32 128, %v36_v1  ;;  %vm63_vm0 = vcmp.eq.s32.totalorder %v44_v17, 0 }
  0x13   :  { %v45_v4 = vadd.f32 0.5, %v41_v2  ;;  %v42_v5 = vcvt.s32.f32 %v37_v3 }
  0x15   :  { %v47_v10 = vmul.f32 0.0625, %v45_v4  ;;  %v46_v11 = vadd.f32 0.5, %v42_v5 }
  0x17   :  { %v49_v12 = vfloor.f32 %v47_v10  ;;  %v48_v13 = vmul.f32 0.0625, %v46_v11 }
  0x19   :  { %v51_v14 = vmul.f32 16.0, %v49_v12  ;;  %v55_v15 = vmul.f32 0.13333334, %v49_v12  ;;  %v50_v16 = vfloor.f32 %v48_v13 }
  0x1b   :  { %v53_v18 = vsub.f32 %v41_v2, %v51_v14  ;;  %v52_v19 = vmul.f32 16.0, %v50_v16  ;;  %v56_v20 = vmul.f32 0.13333334, %v50_v16  ;;  %v81_v21 = vadd.f32 -1.0, %v55_v15 }
  0x1d   :  { %v59_v22 = vmul.f32 0.13333334, %v53_v18  ;;  %v54_v23 = vsub.f32 %v42_v5, %v52_v19  ;;  %v82_v25 = vadd.f32 -1.0, %v56_v20 }
  0x1f   :  { %v83_v24 = vadd.f32 -1.0, %v59_v22  ;;  %v60_v26 = vmul.f32 0.13333334, %v54_v23 }
  0x21   :  { %v64_v27 = vsel %vm63_vm0, %v81_v21, %v83_v24  ;;  %v84_v28 = vadd.f32 -1.0, %v60_v26 }
  0x22   :  { %v68_v29 = vrot.slane %v64_v27, 4 }
  0x23   :  { %v65_v30 = vsel %vm63_vm0, %v82_v25, %v84_v28 }
  0x24   :  { %72 = vst [vmem:[%s153_s1] sm:$0x30] %v68_v29  ;;  %74 = vst [vmem:[%s153_s1 + $0x10] sm:$0x30] %v68_v29  ;;  %v69_v31 = vrot.slane %v65_v30, 4 }
  0x26   :  { %73 = vst [vmem:[%s153_s1 + $0x8] sm:$0x30] %v69_v31  ;;  %75 = vst [vmem:[%s153_s1 + $0x18] sm:$0x30] %v69_v31 }
  0x27   :  { %80 = vsyncpa [#allocation3], 1 }

</bundles_post_ra>
